<compile_context>
chip_gen: v7x
topology: tpu7x:2x2x1
jax: 0.10.0
libtpu: 0.0.40
codegen_flags: <defaults>
</compile_context>

<pallas_src>
import functools

import jax
import jax.numpy as jnp
from jax.experimental import pallas as pl
from jax.experimental.pallas import tpu as pltpu


def _pad_kernel(x_ref, o_ref, *, pad, H, W):
    """x_ref: (bn, bc, H, W)  ->  o_ref: (bn, bc, H+2p, W+2p)."""
    x = x_ref[...]
    if pad == 0:
        o_ref[...] = x
        return

    Wo = W + 2 * pad
    # Build the padded-width interior rows in registers (lane-axis concat).
    zcol = jnp.zeros(x.shape[:3] + (pad,), x.dtype)
    xw = jnp.concatenate([zcol, x, zcol], axis=3)          # (bn, bc, H, Wo)
    zrow = jnp.zeros(x.shape[:2] + (pad, Wo), x.dtype)     # (bn, bc, p, Wo)

    # Three disjoint, full-lane-width row-band stores: each output element is
    # written exactly once and no store carries a lane offset.
    o_ref[:, :, :pad, :] = zrow
    o_ref[:, :, pad:pad + H, :] = xw
    o_ref[:, :, pad + H:, :] = zrow


def zero_pad2d(x, kernel_size):
    """Equivalent of torch.nn.ZeroPad2d(kernel_size) on an NCHW tensor.

    The QuantStub / DeQuantStub in the reference module are identity in eager
    floating-point mode, so the forward pass is exactly a symmetric zero pad.
    """
    N, C, H, W = x.shape
    p = int(kernel_size)
    Ho, Wo = H + 2 * p, W + 2 * p
    itemsize = jnp.dtype(x.dtype).itemsize

    kernel = functools.partial(_pad_kernel, pad=p, H=H, W=W)
    out_shape = jax.ShapeDtypeStruct((N, C, Ho, Wo), x.dtype)

    # Conservative block budget that is safe on every generation (v7x has only
    # 64 MiB VMEM per TC; v5e's default scoped limit is 16 MiB).
    VMEM_BLOCK_BUDGET = 16 * 1024 * 1024

    whole_bytes = N * C * (H * W + Ho * Wo) * itemsize
    if whole_bytes <= VMEM_BLOCK_BUDGET:
        # Whole tensor fits comfortably in VMEM: one grid step, full-array
        # blocks (last two block dims equal the full array dims, so the
        # (8, 128) divisibility constraint does not apply).
        grid = (1,)
        in_specs = [pl.BlockSpec((N, C, H, W), lambda i: (0, 0, 0, 0))]
        out_specs = pl.BlockSpec((N, C, Ho, Wo), lambda i: (0, 0, 0, 0))
        dims = ("arbitrary",)
    else:
        # Tile channels: pick the largest divisor of C whose double-buffered
        # (input + output) blocks fit the budget.
        def fits(ct):
            return 2 * ct * (H * W + Ho * Wo) * itemsize <= VMEM_BLOCK_BUDGET

        c_tile = 1
        for d in range(1, C + 1):
            if C % d == 0 and fits(d):
                c_tile = d

        grid = (N, C // c_tile)
        in_specs = [pl.BlockSpec((1, c_tile, H, W), lambda n, c: (n, c, 0, 0))]
        out_specs = pl.BlockSpec((1, c_tile, Ho, Wo), lambda n, c: (n, c, 0, 0))
        dims = ("parallel", "parallel")  # disjoint output blocks -> megacore OK

    return pl.pallas_call(
        kernel,
        out_shape=out_shape,
        grid_spec=pltpu.PrefetchScalarGridSpec(
            num_scalar_prefetch=0,
            grid=grid,
            in_specs=in_specs,
            out_specs=out_specs,
        ),
        compiler_params=pltpu.CompilerParams(
            dimension_semantics=dims,
            vmem_limit_bytes=32 * 1024 * 1024,
        ),
    )(x)


if __name__ == "__main__":
    key = jax.random.PRNGKey(0)
    # Small NCHW input consistent with the module's forward.
    x = jax.random.normal(key, (2, 4, 16, 16), dtype=jnp.float32)
    kernel_size = 2  # ZeroPad2d padding amount

    out = jax.block_until_ready(zero_pad2d(x, kernel_size))

    # Reference check against jnp.pad
    ref = jnp.pad(
        x,
        ((0, 0), (0, 0), (kernel_size, kernel_size), (kernel_size, kernel_size)),
    )
    assert out.shape == (2, 4, 20, 20), out.shape
    assert jnp.allclose(out, ref), "mismatch vs jnp.pad reference"

    print("KERNEL_OK")
</pallas_src>

<mosaic_0001>
module attributes {stable_mosaic.version = 11 : i64} {
  func.func @_pad_kernel(%arg0: i32, %arg1: memref<2x4x16x16xf32, #tpu.memory_space<vmem>>, %arg2: memref<2x4x20x20xf32, #tpu.memory_space<vmem>>) attributes {dimension_semantics = [#tpu.dimension_semantics<arbitrary>], iteration_bounds = array<i64: 1>, scalar_prefetch = 0 : i64, scratch_operands = 0 : i64, tpu.core_type = #tpu.core_type<tc>, window_params = [{pipeline_mode = #tpu.pipeline_mode<synchronous>, transform_indices = @transform_0, window_bounds = array<i64: 2, 4, 16, 16>}, {pipeline_mode = #tpu.pipeline_mode<synchronous>, transform_indices = @transform_1, window_bounds = array<i64: 2, 4, 20, 20>}]} {
    %c0 = arith.constant 0 : index
    %c0_0 = arith.constant 0 : index
    %c0_1 = arith.constant 0 : index
    %c0_2 = arith.constant 0 : index
    %0 = vector.load %arg1[%c0, %c0_0, %c0_1, %c0_2] : memref<2x4x16x16xf32, #tpu.memory_space<vmem>>, vector<2x4x16x16xf32>
    %cst = arith.constant 0.000000e+00 : f32
    %1 = vector.broadcast %cst : f32 to vector<2x4x16x2xf32>
    %2 = tpu.concatenate %1, %0, %1 in 3 : vector<2x4x16x2xf32>, vector<2x4x16x16xf32>, vector<2x4x16x2xf32> -> vector<2x4x16x20xf32>
    %cst_3 = arith.constant 0.000000e+00 : f32
    %3 = vector.broadcast %cst_3 : f32 to vector<2x4x2x20xf32>
    %c0_4 = arith.constant 0 : index
    %c0_5 = arith.constant 0 : index
    %c0_6 = arith.constant 0 : index
    %c0_7 = arith.constant 0 : index
    %4 = vector.load %arg2[%c0_4, %c0_5, %c0_6, %c0_7] : memref<2x4x20x20xf32, #tpu.memory_space<vmem>>, vector<2x4x2x20xf32>
    tpu.vector_store %arg2[%c0_4, %c0_5, %c0_6, %c0_7], %3 {strides = array<i32>} : memref<2x4x20x20xf32, #tpu.memory_space<vmem>>, vector<2x4x2x20xf32>,
    %c0_8 = arith.constant 0 : index
    %c0_9 = arith.constant 0 : index
    %c2 = arith.constant 2 : index
    %c0_10 = arith.constant 0 : index
    %5 = vector.load %arg2[%c0_8, %c0_9, %c2, %c0_10] : memref<2x4x20x20xf32, #tpu.memory_space<vmem>>, vector<2x4x16x20xf32>
    tpu.vector_store %arg2[%c0_8, %c0_9, %c2, %c0_10], %2 {strides = array<i32>} : memref<2x4x20x20xf32, #tpu.memory_space<vmem>>, vector<2x4x16x20xf32>,
    %c0_11 = arith.constant 0 : index
    %c0_12 = arith.constant 0 : index
    %c18 = arith.constant 18 : index
    %c0_13 = arith.constant 0 : index
    %6 = vector.load %arg2[%c0_11, %c0_12, %c18, %c0_13] : memref<2x4x20x20xf32, #tpu.memory_space<vmem>>, vector<2x4x2x20xf32>
    tpu.vector_store %arg2[%c0_11, %c0_12, %c18, %c0_13], %3 {strides = array<i32>} : memref<2x4x20x20xf32, #tpu.memory_space<vmem>>, vector<2x4x2x20xf32>,
    return
  }
  func.func @transform_0(%arg0: i32) -> (i32, i32, i32, i32) {
    %c0_i32 = arith.constant 0 : i32
    %c0_i32_0 = arith.constant 0 : i32
    %c0_i32_1 = arith.constant 0 : i32
    %c0_i32_2 = arith.constant 0 : i32
    %c0_i32_3 = arith.constant 0 : i32
    return %c0_i32, %c0_i32_0, %c0_i32_1, %c0_i32_2 : i32, i32, i32, i32
  }
  func.func @transform_1(%arg0: i32) -> (i32, i32, i32, i32) {
    %c0_i32 = arith.constant 0 : i32
    %c0_i32_0 = arith.constant 0 : i32
    %c0_i32_1 = arith.constant 0 : i32
    %c0_i32_2 = arith.constant 0 : i32
    %c0_i32_3 = arith.constant 0 : i32
    return %c0_i32, %c0_i32_0, %c0_i32_1, %c0_i32_2 : i32, i32, i32, i32
  }
}

</mosaic_0001>

<bundles_post_ra>
// kernel: tpu_custom_call.1
= control target key start
LH: loop header
LB: loop body
LE: loop exit
PB: predicated region body
PF: predicated region fallthrough
CT: control target
= control target key end

     0   :  { %6 = vsyncpa [#allocation3], 0  ;;  %s204_s6 = smov [#allocation2]   ;;  %s391_s0 = inlined_call_operand.hbm [shape: f32[2,4,16,16], index: 0, kind: input, shape index: {}]   ;;  %s392_s1 = inlined_call_operand.vmem [shape: f32[2,4,20,20], index: 1, kind: output, shape index: {}]  }
   0x1   :  { %s12_s7 = sshll.u32 %s204_s6, 4  ;;  %s180_s10 = scalar_lea.hbm %s391_s0, 2048  ;;  %s13_s7 = int_to_ptr.vmem [resolvable:$true] %s12_s7 }
   0x2   :  { %p181_p0 = scmp.ne.s32.totalorder %s391_s0, %s180_s10  ;;  %p184_p1 = scmp.lt.u32.totalorder %s180_s10, %s391_s0 }
   0x4   :  { %p186_p2 = pnand %p184_p1, %p181_p0 }
   0x6   :  { %189 = shalt.err (!%p186_p2)
}
   0x7   :  { %s190_s15 = scalar_lea.vmem %s13_s7, 2048  ;;  %p195_p4 = scmp.lt.s32.totalorder %s13_s7, %s13_s7 }
   0x8   :  { %p191_p3 = scmp.ne.s32.totalorder %s13_s7, %s190_s15  ;;  %p196_p5 = scmp.lt.s32.totalorder %s190_s15, %s190_s15 }
   0xa   :  { %p197_p6 = por %p196_p5, %p195_p4 }
   0xc   :  { %p198_p7 = pnand %p197_p6, %p191_p3 }
   0xe   :  { %201 = shalt.err (!%p198_p7)
}
   0xf   :  { %s205_s16 = smov 128   ;;  %s206_s17 = smov 8  }
  0x10   :  { %18 = dma.hbm_to_vmem [thread:$0]  %s391_s0, 2048, %s13_s7, [#allocation3], %s205_s16, %s205_s16, %s206_s17  }
  0x11   :  { %202 = dma.done.wait [#allocation3], 2048  }
  0x12   :  { %203 = vsyncadd [#allocation3], 4294965248  ;;  %vm136_vm0 = vcmask 156672   ;;  %v207_v0 = vmov 0.0   ;;  %v24_v1 = vld [vmem:[#allocation2 + $0x10] sm:$0xff]  ;;  %v22_v2 = vld [vmem:[#allocation2] sm:$0xff] }
  0x13   :  { %137 = vst.msk [vmem:[%s392_s1] sm:$0x3] %vm136_vm0, %v207_v0  ;;  %138 = vst.msk [vmem:[%s392_s1 + $0x18] sm:$0x3] %vm136_vm0, %v207_v0  ;;  %s208_s22 = smov 2   ;;  %v25_v3 = vld [vmem:[#allocation2 + $0x18] sm:$0xff] }
  0x14   :  { %139 = vst.msk [vmem:[%s392_s1 + $0x30] sm:$0x3] %vm136_vm0, %v207_v0  ;;  %140 = vst.msk [vmem:[%s392_s1 + $0x48] sm:$0x3] %vm136_vm0, %v207_v0  ;;  %58 = vrot.lane.b32.xlu1 %v24_v1, %s208_s22  ;;  %54 = vrot.lane.b32.xlu0 %v22_v2, %s208_s22  ;;  %v23_v4 = vld [vmem:[#allocation2 + $0x8] sm:$0xff]  ;;  %v26_v6 = vld [vmem:[#allocation2 + $0x20] sm:$0xff] }
  0x15   :  { %141 = vst.msk [vmem:[%s392_s1 + $0x60] sm:$0x3] %vm136_vm0, %v207_v0  ;;  %142 = vst.msk [vmem:[%s392_s1 + $0x78] sm:$0x3] %vm136_vm0, %v207_v0  ;;  %v27_v5 = vld [vmem:[#allocation2 + $0x28] sm:$0xff]  ;;  %v29_v7 = vld [vmem:[#allocation2 + $0x38] sm:$0xff] }
  0x16   :  { %143 = vst.msk [vmem:[%s392_s1 + $0x90] sm:$0x3] %vm136_vm0, %v207_v0  ;;  %144 = vst.msk [vmem:[%s392_s1 + $0xa8] sm:$0x3] %vm136_vm0, %v207_v0  ;;  %v28_v8 = vld [vmem:[#allocation2 + $0x30] sm:$0xff]  ;;  %v31_v9 = vld [vmem:[#allocation2 + $0x48] sm:$0xff] }
  0x17   :  { %162 = vst.msk [vmem:[%s392_s1 + $0x12] sm:$0x3] %vm136_vm0, %v207_v0  ;;  %163 = vst.msk [vmem:[%s392_s1 + $0x2a] sm:$0x3] %vm136_vm0, %v207_v0  ;;  %v30_v10 = vld [vmem:[#allocation2 + $0x40] sm:$0xff]  ;;  %v33_v11 = vld [vmem:[#allocation2 + $0x58] sm:$0xff] }
  0x18   :  { %164 = vst.msk [vmem:[%s392_s1 + $0x42] sm:$0x3] %vm136_vm0, %v207_v0  ;;  %165 = vst.msk [vmem:[%s392_s1 + $0x5a] sm:$0x3] %vm136_vm0, %v207_v0  ;;  %60 = vrot.lane.b32.xlu1 %v25_v3, %s208_s22  ;;  %56 = vrot.lane.b32.xlu0 %v23_v4, %s208_s22  ;;  %v32_v12 = vld [vmem:[#allocation2 + $0x50] sm:$0xff]  ;;  %v35_v13 = vld [vmem:[#allocation2 + $0x68] sm:$0xff] }
  0x19   :  { %166 = vst.msk [vmem:[%s392_s1 + $0x72] sm:$0x3] %vm136_vm0, %v207_v0  ;;  %167 = vst.msk [vmem:[%s392_s1 + $0x8a] sm:$0x3] %vm136_vm0, %v207_v0  ;;  %v34_v14 = vld [vmem:[#allocation2 + $0x60] sm:$0xff]  ;;  %v37_v15 = vld [vmem:[#allocation2 + $0x78] sm:$0xff] }
  0x1a   :  { %168 = vst.msk [vmem:[%s392_s1 + $0xa2] sm:$0x3] %vm136_vm0, %v207_v0  ;;  %169 = vst.msk [vmem:[%s392_s1 + $0xba] sm:$0x3] %vm136_vm0, %v207_v0  ;;  %v36_v16 = vld [vmem:[#allocation2 + $0x70] sm:$0xff]  ;;  %vm102_vm1 = vcmask 15360  }
  0x1b   :  { %vm119_vm2 = vcmask 146432   ;;  %vm145_vm3 = vcmask 162816  }
  0x1c   :  { %64 = vrot.lane.b32.xlu1 %v27_v5, %s208_s22  ;;  %62 = vrot.lane.b32.xlu0 %v26_v6, %s208_s22 }
  0x20   :  { %68 = vrot.lane.b32.xlu1 %v29_v7, %s208_s22  ;;  %66 = vrot.lane.b32.xlu0 %v28_v8, %s208_s22 }
  0x24   :  { %72 = vrot.lane.b32.xlu1 %v31_v9, %s208_s22  ;;  %70 = vrot.lane.b32.xlu0 %v30_v10, %s208_s22 }
  0x28   :  { %76 = vrot.lane.b32.xlu1 %v33_v11, %s208_s22  ;;  %74 = vrot.lane.b32.xlu0 %v32_v12, %s208_s22 }
  0x2c   :  { %80 = vrot.lane.b32.xlu1 %v35_v13, %s208_s22  ;;  %78 = vrot.lane.b32.xlu0 %v34_v14, %s208_s22 }
  0x30   :  { %84 = vrot.lane.b32.xlu1 %v37_v15, %s208_s22  ;;  %82 = vrot.lane.b32.xlu0 %v36_v16, %s208_s22 }
  0x86   :  { %v59_v17 = vpop.permute.xlu1 %58  ;;  %v55_v18 = vpop.permute.xlu0 %54 }
  0x87   :  { %v105_v19 = vsel %vm102_vm1, 0.0, %v59_v17  ;;  %v103_v20 = vsel %vm102_vm1, 0.0, %v55_v18 }
  0x88   :  { %v122_v21 = vsel %vm119_vm2, %v105_v19, 0.0  ;;  %v120_v22 = vsel %vm119_vm2, %v103_v20, 0.0 }
  0x89   :  { %148 = vst.msk [vmem:[%s392_s1 + $0x1a] sm:$0xff] %vm145_vm3, %v122_v21  ;;  %146 = vst.msk [vmem:[%s392_s1 + $0x2] sm:$0xff] %vm145_vm3, %v120_v22 }
  0x8a   :  { %v61_v23 = vpop.permute.xlu1 %60  ;;  %v57_v24 = vpop.permute.xlu0 %56 }
  0x8b   :  { %v106_v25 = vsel %vm102_vm1, 0.0, %v61_v23  ;;  %v104_v26 = vsel %vm102_vm1, 0.0, %v57_v24 }
  0x8c   :  { %v123_v27 = vsel %vm119_vm2, %v106_v25, 0.0  ;;  %v121_v28 = vsel %vm119_vm2, %v104_v26, 0.0 }
  0x8d   :  { %149 = vst.msk [vmem:[%s392_s1 + $0x22] sm:$0xff] %vm145_vm3, %v123_v27  ;;  %147 = vst.msk [vmem:[%s392_s1 + $0xa] sm:$0xff] %vm145_vm3, %v121_v28 }
  0x8e   :  { %v65_v29 = vpop.permute.xlu1 %64  ;;  %v63_v30 = vpop.permute.xlu0 %62 }
  0x8f   :  { %v108_v31 = vsel %vm102_vm1, 0.0, %v65_v29  ;;  %v107_v32 = vsel %vm102_vm1, 0.0, %v63_v30 }
  0x90   :  { %v125_v33 = vsel %vm119_vm2, %v108_v31, 0.0  ;;  %v124_v34 = vsel %vm119_vm2, %v107_v32, 0.0 }
  0x91   :  { %151 = vst.msk [vmem:[%s392_s1 + $0x3a] sm:$0xff] %vm145_vm3, %v125_v33  ;;  %150 = vst.msk [vmem:[%s392_s1 + $0x32] sm:$0xff] %vm145_vm3, %v124_v34 }
  0x92   :  { %v69_v35 = vpop.permute.xlu1 %68  ;;  %v67_v36 = vpop.permute.xlu0 %66 }
  0x93   :  { %v110_v37 = vsel %vm102_vm1, 0.0, %v69_v35  ;;  %v109_v38 = vsel %vm102_vm1, 0.0, %v67_v36 }
  0x94   :  { %v127_v39 = vsel %vm119_vm2, %v110_v37, 0.0  ;;  %v126_v40 = vsel %vm119_vm2, %v109_v38, 0.0 }
  0x95   :  { %153 = vst.msk [vmem:[%s392_s1 + $0x52] sm:$0xff] %vm145_vm3, %v127_v39  ;;  %152 = vst.msk [vmem:[%s392_s1 + $0x4a] sm:$0xff] %vm145_vm3, %v126_v40 }
  0x96   :  { %v73_v41 = vpop.permute.xlu1 %72  ;;  %v71_v42 = vpop.permute.xlu0 %70 }
  0x97   :  { %v112_v43 = vsel %vm102_vm1, 0.0, %v73_v41  ;;  %v111_v44 = vsel %vm102_vm1, 0.0, %v71_v42 }
  0x98   :  { %v129_v45 = vsel %vm119_vm2, %v112_v43, 0.0  ;;  %v128_v46 = vsel %vm119_vm2, %v111_v44, 0.0 }
  0x99   :  { %155 = vst.msk [vmem:[%s392_s1 + $0x6a] sm:$0xff] %vm145_vm3, %v129_v45  ;;  %154 = vst.msk [vmem:[%s392_s1 + $0x62] sm:$0xff] %vm145_vm3, %v128_v46 }
  0x9a   :  { %v77_v47 = vpop.permute.xlu1 %76  ;;  %v75_v48 = vpop.permute.xlu0 %74 }
  0x9b   :  { %v114_v49 = vsel %vm102_vm1, 0.0, %v77_v47  ;;  %v113_v50 = vsel %vm102_vm1, 0.0, %v75_v48 }
  0x9c   :  { %v131_v51 = vsel %vm119_vm2, %v114_v49, 0.0  ;;  %v130_v52 = vsel %vm119_vm2, %v113_v50, 0.0 }
  0x9d   :  { %157 = vst.msk [vmem:[%s392_s1 + $0x82] sm:$0xff] %vm145_vm3, %v131_v51  ;;  %156 = vst.msk [vmem:[%s392_s1 + $0x7a] sm:$0xff] %vm145_vm3, %v130_v52 }
  0x9e   :  { %v81_v53 = vpop.permute.xlu1 %80  ;;  %v79_v54 = vpop.permute.xlu0 %78 }
  0x9f   :  { %v116_v55 = vsel %vm102_vm1, 0.0, %v81_v53  ;;  %v115_v56 = vsel %vm102_vm1, 0.0, %v79_v54 }
  0xa0   :  { %v133_v57 = vsel %vm119_vm2, %v116_v55, 0.0  ;;  %v132_v58 = vsel %vm119_vm2, %v115_v56, 0.0 }
  0xa1   :  { %159 = vst.msk [vmem:[%s392_s1 + $0x9a] sm:$0xff] %vm145_vm3, %v133_v57  ;;  %158 = vst.msk [vmem:[%s392_s1 + $0x92] sm:$0xff] %vm145_vm3, %v132_v58 }
  0xa2   :  { %v85_v59 = vpop.permute.xlu1 %84  ;;  %v83_v60 = vpop.permute.xlu0 %82 }
  0xa3   :  { %v118_v61 = vsel %vm102_vm1, 0.0, %v85_v59  ;;  %v117_v62 = vsel %vm102_vm1, 0.0, %v83_v60 }
  0xa4   :  { %v135_v63 = vsel %vm119_vm2, %v118_v61, 0.0  ;;  %v134_v0 = vsel %vm119_vm2, %v117_v62, 0.0 }
  0xa5   :  { %161 = vst.msk [vmem:[%s392_s1 + $0xb2] sm:$0xff] %vm145_vm3, %v135_v63  ;;  %160 = vst.msk [vmem:[%s392_s1 + $0xaa] sm:$0xff] %vm145_vm3, %v134_v0 }
  0xa6   :  { %174 = vsyncpa [#allocation3], 1 }

</bundles_post_ra>
